<compile_context>
chip_gen: v5e
topology: v5e:2x2
jax: 0.10.0
libtpu: 0.0.40
codegen_flags: <defaults>
</compile_context>

<pallas_src>
import functools

import jax
import jax.numpy as jnp
import numpy as np
from jax.experimental import pallas as pl
from jax.experimental.pallas import tpu as pltpu

_STRIDES = (2, 2, 2, 1, 2)
_BN_EPS = 1e-5


def _round_up(v, m):
    return (v + m - 1) // m * m


# ---------------------------------------------------------------------------
# Kernel 1: fused im2col conv matmul + folded-BatchNorm scale/shift + ReLU
# ---------------------------------------------------------------------------
def _conv_mm_bn_act_kernel(cols_ref, w_ref, scale_ref, shift_ref, o_ref, *, relu):
    # cols_ref : (Mp, Kp)  im2col patches (rows = n*ho*wo)
    # w_ref    : (Kp, Cp)  conv weight as matmul RHS
    # scale_ref: (1, Cp)   gamma / sqrt(var + eps)
    # shift_ref: (1, Cp)   beta + scale * (conv_bias - running_mean)
    # o_ref    : (Mp, Cp)
    acc = jnp.dot(cols_ref[...], w_ref[...], preferred_element_type=jnp.float32)
    acc = acc * scale_ref[...] + shift_ref[...]
    if relu:
        acc = jnp.maximum(acc, 0.0)
    o_ref[...] = acc.astype(o_ref.dtype)


def conv3x3_bn_act(x, weight, scale, shift, *, stride, padding, relu):
    """NCHW Conv2d(KxK, stride, padding) with fused scale/shift (+ReLU)."""
    n, cin, h, w = map(int, x.shape)
    cout, _, kh, kw = map(int, weight.shape)
    ho = (h + 2 * padding - kh) // stride + 1
    wo = (w + 2 * padding - kw) // stride + 1

    # ---- wrapper-side layout plumbing (plain XLA) ----
    xp = jnp.pad(x, ((0, 0), (0, 0), (padding, padding), (padding, padding)))
    taps = []
    for ki in range(kh):
        for kj in range(kw):
            taps.append(xp[:, :, ki:ki + stride * (ho - 1) + 1:stride,
                               kj:kj + stride * (wo - 1) + 1:stride])
    cols = jnp.stack(taps, axis=2)                    # (n, cin, kh*kw, ho, wo)
    cols = cols.transpose(0, 3, 4, 1, 2)              # (n, ho, wo, cin, kh*kw)
    cols = cols.reshape(n * ho * wo, cin * kh * kw)   # K index = ci*kh*kw + ki*kw + kj
    wmat = weight.reshape(cout, cin * kh * kw).T      # (K, Cout), same K ordering

    m, k = n * ho * wo, cin * kh * kw
    mp, kp, cp = _round_up(m, 8), _round_up(k, 128), _round_up(cout, 128)
    cols_p = jnp.pad(cols, ((0, mp - m), (0, kp - k))).astype(jnp.float32)
    wmat_p = jnp.pad(wmat, ((0, kp - k), (0, cp - cout))).astype(jnp.float32)
    scale_p = jnp.pad(scale.reshape(1, cout).astype(jnp.float32),
                      ((0, 0), (0, cp - cout)))
    shift_p = jnp.pad(shift.reshape(1, cout).astype(jnp.float32),
                      ((0, 0), (0, cp - cout)))

    out = pl.pallas_call(
        functools.partial(_conv_mm_bn_act_kernel, relu=relu),
        out_shape=jax.ShapeDtypeStruct((mp, cp), jnp.float32),
        grid=(1,),
        in_specs=[
            pl.BlockSpec((mp, kp), lambda i: (0, 0)),
            pl.BlockSpec((kp, cp), lambda i: (0, 0)),
            pl.BlockSpec((1, cp), lambda i: (0, 0)),
            pl.BlockSpec((1, cp), lambda i: (0, 0)),
        ],
        out_specs=pl.BlockSpec((mp, cp), lambda i: (0, 0)),
        compiler_params=pltpu.CompilerParams(dimension_semantics=("arbitrary",)),
    )(cols_p, wmat_p, scale_p, shift_p)

    out = out[:m, :cout].reshape(n, ho, wo, cout).transpose(0, 3, 1, 2)
    return out.astype(x.dtype)


# ---------------------------------------------------------------------------
# Kernel 2: fused GlobalAvgPool + Linear + Sigmoid head
# ---------------------------------------------------------------------------
def _gap_fc_sigmoid_kernel(x_ref, w_ref, b_ref, o_ref):
    # x_ref: (N, HW, C); w_ref: (C, Cls_p); b_ref: (1, Cls_p); o_ref: (N, Cls_p)
    pooled = jnp.mean(x_ref[...].astype(jnp.float32), axis=1)       # (N, C)
    logits = jnp.dot(pooled, w_ref[...],
                     preferred_element_type=jnp.float32) + b_ref[...]
    o_ref[...] = (1.0 / (1.0 + jnp.exp(-logits))).astype(o_ref.dtype)


def gap_fc_sigmoid(x, fc_w, fc_b):
    n, c, h, w = map(int, x.shape)
    classes = int(fc_w.shape[0])
    cls_p = _round_up(classes, 128)
    xr = x.reshape(n, c, h * w).transpose(0, 2, 1).astype(jnp.float32)  # (N, HW, C)
    wt = jnp.pad(fc_w.T.astype(jnp.float32), ((0, 0), (0, cls_p - classes)))
    bt = jnp.pad(fc_b.reshape(1, classes).astype(jnp.float32),
                 ((0, 0), (0, cls_p - classes)))
    out = pl.pallas_call(
        _gap_fc_sigmoid_kernel,
        out_shape=jax.ShapeDtypeStruct((n, cls_p), jnp.float32),
        grid=(1,),
        in_specs=[
            pl.BlockSpec((n, h * w, c), lambda i: (0, 0, 0)),
            pl.BlockSpec((c, cls_p), lambda i: (0, 0)),
            pl.BlockSpec((1, cls_p), lambda i: (0, 0)),
        ],
        out_specs=pl.BlockSpec((n, cls_p), lambda i: (0, 0)),
        compiler_params=pltpu.CompilerParams(dimension_semantics=("arbitrary",)),
    )(xr, wt, bt)
    return out[:, :classes].astype(x.dtype)


# ---------------------------------------------------------------------------
# ConvOffset2D (deform-conv): offset conv (Pallas) + bilinear resample (XLA)
# ---------------------------------------------------------------------------
def conv_offset_2d(x, offset_weight):
    n, c, h, w = map(int, x.shape)
    ones = jnp.ones((2 * c,), jnp.float32)
    zeros = jnp.zeros((2 * c,), jnp.float32)
    # Conv2d(c, 2c, 3, padding=1, bias=False) via the fused Pallas conv kernel.
    offsets = conv3x3_bn_act(x, offset_weight, ones, zeros,
                             stride=1, padding=1, relu=False)   # (n, 2c, h, w)

    # Reference ConvOffset2D reinterprets (n, 2c, h, w) as (n*c, h*w, 2) in flat
    # row-major order; replicate that exactly.
    offsets = offsets.reshape(n * c, h * w, 2).astype(jnp.float32)
    x_flat = x.reshape(n * c, h * w).astype(jnp.float32)

    gy, gx = jnp.meshgrid(jnp.arange(h, dtype=jnp.float32),
                          jnp.arange(w, dtype=jnp.float32), indexing="ij")
    base = jnp.stack([gy.reshape(-1), gx.reshape(-1)], axis=-1)  # (h*w, 2) = (y, x)
    coords = offsets + base[None]
    cy = jnp.clip(coords[..., 0], 0.0, float(h - 1))
    cx = jnp.clip(coords[..., 1], 0.0, float(w - 1))
    y0, y1 = jnp.floor(cy), jnp.ceil(cy)
    x0, x1 = jnp.floor(cx), jnp.ceil(cx)

    # TODO(synk): data-dependent per-pixel gather stays in plain JAX/XLA.
    def gather(yy, xx):
        idx = (yy * w + xx).astype(jnp.int32)
        return jnp.take_along_axis(x_flat, idx, axis=1)

    v_ll, v_hl = gather(y0, x0), gather(y1, x0)
    v_lh, v_hh = gather(y0, x1), gather(y1, x1)
    fy, fx = cy - y0, cx - x0
    v_xl = v_ll + (v_hl - v_ll) * fy          # value at (y, floor_x)
    v_xh = v_lh + (v_hh - v_lh) * fy          # value at (y, ceil_x)
    out = v_xl + (v_xh - v_xl) * fx
    return out.reshape(n, c, h, w).astype(x.dtype)


# ---------------------------------------------------------------------------
# Model assembly
# ---------------------------------------------------------------------------
def _fold_bn(conv_bias, gamma, beta, mean, var, eps=_BN_EPS):
    scale = gamma / jnp.sqrt(var + eps)
    shift = beta + scale * (conv_bias - mean)
    return scale, shift


def mymodel_forward(params, x):
    for l in range(5):
        i = l + 1
        x = conv_offset_2d(x, params[f"offset{i}_w"])
        scale, shift = _fold_bn(params[f"conv{i}_b"], params[f"bn{i}_gamma"],
                                params[f"bn{i}_beta"], params[f"bn{i}_mean"],
                                params[f"bn{i}_var"])
        x = conv3x3_bn_act(x, params[f"conv{i}_w"], scale, shift,
                           stride=_STRIDES[l], padding=1, relu=True)
    return gap_fc_sigmoid(x, params["fc_w"], params["fc_b"])


def init_params(key, classes=8):
    conv_num = 32
    chans = (1, conv_num, conv_num * 2, conv_num * 4, conv_num * 8, conv_num * 4)
    keys = iter(jax.random.split(key, 64))
    p = {}
    for l in range(5):
        cin, cout = chans[l], chans[l + 1]
        # ConvOffset2D weights: N(0, 0.01), bias=False.
        p[f"offset{l+1}_w"] = 0.01 * jax.random.normal(
            next(keys), (2 * cin, cin, 3, 3), jnp.float32)
        p[f"conv{l+1}_w"] = jax.random.normal(
            next(keys), (cout, cin, 3, 3), jnp.float32) / np.sqrt(cin * 9)
        p[f"conv{l+1}_b"] = 0.01 * jax.random.normal(next(keys), (cout,), jnp.float32)
        p[f"bn{l+1}_gamma"] = 1.0 + 0.1 * jax.random.normal(next(keys), (cout,), jnp.float32)
        p[f"bn{l+1}_beta"] = 0.1 * jax.random.normal(next(keys), (cout,), jnp.float32)
        p[f"bn{l+1}_mean"] = 0.1 * jax.random.normal(next(keys), (cout,), jnp.float32)
        p[f"bn{l+1}_var"] = 1.0 + 0.1 * jnp.abs(
            jax.random.normal(next(keys), (cout,), jnp.float32))
    p["fc_w"] = jax.random.normal(next(keys), (classes, chans[5]), jnp.float32) / np.sqrt(chans[5])
    p["fc_b"] = jnp.zeros((classes,), jnp.float32)
    return p


# ---------------------------------------------------------------------------
# Reference (XLA) for the fused conv kernel unit-check
# ---------------------------------------------------------------------------
def _conv_bn_act_reference(x, w, scale, shift, stride, padding, relu):
    y = jax.lax.conv_general_dilated(
        x, w, window_strides=(stride, stride),
        padding=[(padding, padding), (padding, padding)],
        dimension_numbers=("NCHW", "OIHW", "NCHW"),
        precision=jax.lax.Precision.HIGHEST)
    y = y * scale[None, :, None, None] + shift[None, :, None, None]
    return jnp.maximum(y, 0.0) if relu else y


if __name__ == "__main__":
    root = jax.random.PRNGKey(0)
    k_params, k_x, k_t1, k_t2 = jax.random.split(root, 4)

    # Unit-check the fused conv+BN+ReLU Pallas kernel against the XLA conv.
    xt = jax.random.normal(k_t1, (2, 32, 8, 8), jnp.float32)
    wt = jax.random.normal(k_t2, (64, 32, 3, 3), jnp.float32) / np.sqrt(32 * 9)
    sc = jnp.linspace(0.5, 1.5, 64, dtype=jnp.float32)
    sh = jnp.linspace(-0.2, 0.2, 64, dtype=jnp.float32)
    got = conv3x3_bn_act(xt, wt, sc, sh, stride=2, padding=1, relu=True)
    ref = _conv_bn_act_reference(xt, wt, sc, sh, 2, 1, True)
    np.testing.assert_allclose(np.asarray(got), np.asarray(ref),
                               rtol=1e-2, atol=1e-2)

    # Full Mymodel forward on (batch=2, channels=1, 16, 16).
    params = init_params(k_params, classes=8)
    x = jax.random.normal(k_x, (2, 1, 16, 16), jnp.float32)
    fwd = jax.jit(mymodel_forward)
    out = jax.block_until_ready(fwd(params, x))

    assert out.shape == (2, 8), out.shape
    assert bool(jnp.all(jnp.isfinite(out)))
    assert bool(jnp.all((out >= 0.0) & (out <= 1.0)))
    print("KERNEL_OK")
</pallas_src>

<mosaic_0001>
module attributes {stable_mosaic.version = 11 : i64} {
  func.func @_conv_mm_bn_act_kernel(%arg0: i32, %arg1: memref<32x384xf32, #tpu.memory_space<vmem>>, %arg2: memref<384x128xf32, #tpu.memory_space<vmem>>, %arg3: memref<1x128xf32, #tpu.memory_space<vmem>>, %arg4: memref<1x128xf32, #tpu.memory_space<vmem>>, %arg5: memref<32x128xf32, #tpu.memory_space<vmem>>) attributes {dimension_semantics = [#tpu.dimension_semantics<arbitrary>], iteration_bounds = array<i64: 1>, scalar_prefetch = 0 : i64, scratch_operands = 0 : i64, tpu.core_type = #tpu.core_type<tc>, window_params = [{pipeline_mode = #tpu.pipeline_mode<synchronous>, transform_indices = @transform_0, window_bounds = array<i64: 32, 384>}, {pipeline_mode = #tpu.pipeline_mode<synchronous>, transform_indices = @transform_1, window_bounds = array<i64: 384, 128>}, {pipeline_mode = #tpu.pipeline_mode<synchronous>, transform_indices = @transform_2, window_bounds = array<i64: 1, 128>}, {pipeline_mode = #tpu.pipeline_mode<synchronous>, transform_indices = @transform_3, window_bounds = array<i64: 1, 128>}, {pipeline_mode = #tpu.pipeline_mode<synchronous>, transform_indices = @transform_4, window_bounds = array<i64: 32, 128>}]} {
    %c0 = arith.constant 0 : index
    %c0_0 = arith.constant 0 : index
    %0 = vector.load %arg1[%c0, %c0_0] : memref<32x384xf32, #tpu.memory_space<vmem>>, vector<32x384xf32>
    %c0_1 = arith.constant 0 : index
    %c0_2 = arith.constant 0 : index
    %1 = vector.load %arg2[%c0_1, %c0_2] : memref<384x128xf32, #tpu.memory_space<vmem>>, vector<384x128xf32>
    %cst = arith.constant dense<0.000000e+00> : vector<32x128xf32>
    %2 = tpu.matmul %0, %1, %cst {dimension_numbers = #tpu.dot_dimension_numbers<[1], [0], [0], [1], [0, 0, 1, 1], [], []>} : vector<32x384xf32>, vector<384x128xf32>, vector<32x128xf32> -> vector<32x128xf32>
    %c0_3 = arith.constant 0 : index
    %c0_4 = arith.constant 0 : index
    %3 = vector.load %arg3[%c0_3, %c0_4] : memref<1x128xf32, #tpu.memory_space<vmem>>, vector<1x128xf32>
    %4 = vector.broadcast %3 : vector<1x128xf32> to vector<32x128xf32>
    %5 = arith.mulf %2, %4 : vector<32x128xf32>
    %c0_5 = arith.constant 0 : index
    %c0_6 = arith.constant 0 : index
    %6 = vector.load %arg4[%c0_5, %c0_6] : memref<1x128xf32, #tpu.memory_space<vmem>>, vector<1x128xf32>
    %7 = vector.broadcast %6 : vector<1x128xf32> to vector<32x128xf32>
    %8 = arith.addf %5, %7 : vector<32x128xf32>
    %cst_7 = arith.constant 0.000000e+00 : f32
    %9 = vector.broadcast %cst_7 : f32 to vector<32x128xf32>
    %10 = arith.maximumf %8, %9 : vector<32x128xf32>
    %c0_8 = arith.constant 0 : index
    %c0_9 = arith.constant 0 : index
    %11 = vector.load %arg5[%c0_8, %c0_9] : memref<32x128xf32, #tpu.memory_space<vmem>>, vector<32x128xf32>
    tpu.vector_store %arg5[%c0_8, %c0_9], %10 {strides = array<i32>} : memref<32x128xf32, #tpu.memory_space<vmem>>, vector<32x128xf32>,
    return
  }
  func.func @transform_0(%arg0: i32) -> (i32, i32) {
    %c0_i32 = arith.constant 0 : i32
    %c0_i32_0 = arith.constant 0 : i32
    %c0_i32_1 = arith.constant 0 : i32
    return %c0_i32, %c0_i32_0 : i32, i32
  }
  func.func @transform_1(%arg0: i32) -> (i32, i32) {
    %c0_i32 = arith.constant 0 : i32
    %c0_i32_0 = arith.constant 0 : i32
    %c0_i32_1 = arith.constant 0 : i32
    return %c0_i32, %c0_i32_0 : i32, i32
  }
  func.func @transform_2(%arg0: i32) -> (i32, i32) {
    %c0_i32 = arith.constant 0 : i32
    %c0_i32_0 = arith.constant 0 : i32
    %c0_i32_1 = arith.constant 0 : i32
    return %c0_i32, %c0_i32_0 : i32, i32
  }
  func.func @transform_3(%arg0: i32) -> (i32, i32) {
    %c0_i32 = arith.constant 0 : i32
    %c0_i32_0 = arith.constant 0 : i32
    %c0_i32_1 = arith.constant 0 : i32
    return %c0_i32, %c0_i32_0 : i32, i32
  }
  func.func @transform_4(%arg0: i32) -> (i32, i32) {
    %c0_i32 = arith.constant 0 : i32
    %c0_i32_0 = arith.constant 0 : i32
    %c0_i32_1 = arith.constant 0 : i32
    return %c0_i32, %c0_i32_0 : i32, i32
  }
}

</mosaic_0001>

<bundles_post_ra>
// kernel: tpu_custom_call.1
= control target key start
LH: loop header
LB: loop body
LE: loop exit
PB: predicated region body
PF: predicated region fallthrough
CT: control target
= control target key end

     0   :  { %9 = vsyncpa [#allocation3], 0  ;;  %s397_s0 = inlined_call_operand.hbm [shape: f32[32,384], index: 0, kind: input, shape index: {}]   ;;  %s398_s1 = inlined_call_operand.hbm [shape: f32[384,128], index: 1, kind: input, shape index: {}]   ;;  %s399_s2 = inlined_call_operand.vmem [shape: f32[1,128], index: 2, kind: input, shape index: {}]   ;;  %s400_s3 = inlined_call_operand.vmem [shape: f32[1,128], index: 3, kind: input, shape index: {}]   ;;  %s401_s4 = inlined_call_operand.hbm [shape: f32[32,128], index: 4, kind: output, shape index: {}]  }
   0x1   :  { %10 = vsyncpa [#allocation6], 0 }
   0x2   :  { %11 = vsyncpa [#allocation4], 0  ;;  %s16_s17 = sshll.u32 %s397_s0, 4  ;;  %s344_s18 = smov [#allocation2]   ;;  %s17_s17 = int_to_ptr.hbm [resolvable:$true] %s16_s17 }
   0x3   :  { %s18_s19 = sshll.u32 %s344_s18, 4  ;;  %s29_s22 = sshll.u32 %s398_s1, 4  ;;  %s19_s19 = int_to_ptr.vmem [resolvable:$true] %s18_s19  ;;  %s30_s22 = int_to_ptr.hbm [resolvable:$true] %s29_s22 }
   0x4   :  { %s345_s23 = smov 384   ;;  %s346_s24 = smov 24  }
   0x5   :  { %24 = dma.hbm_to_vmem [thread:$0]  %s17_s17, 1536, %s19_s19, [#allocation3], %s345_s23, %s345_s23, %s346_s24  }
   0x6   :  { %s347_s25 = smov [#allocation5]   ;;  %s348_s27 = smov 128  }
   0x7   :  { %s31_s26 = sshll.u32 %s347_s25, 4  ;;  %s349_s28 = smov 8   ;;  %s32_s26 = int_to_ptr.vmem [resolvable:$true] %s31_s26 }
   0x8   :  { %37 = dma.hbm_to_vmem [thread:$0]  %s30_s22, 6144, %s32_s26, [#allocation6], %s348_s27, %s348_s27, %s349_s28  }
   0x9   :  { %338 = dma.done.wait [#allocation3], 1536  }
   0xa   :  { %339 = vsyncadd [#allocation3], 4294965760 }
   0xb   :  { %340 = dma.done.wait [#allocation6], 6144  }
   0xc   :  { %341 = vsyncadd [#allocation6], 4294961152  ;;  %v109_v0 = vld [vmem:[#allocation5 + $0x178] sm:$0xff]  ;;  %v108_v1 = vld [vmem:[#allocation5 + $0x170] sm:$0xff]  ;;  %s227_s7 = sshll.u32 %s401_s4, 4  ;;  %s228_s7 = int_to_ptr.hbm [resolvable:$true] %s227_s7 }
   0xd   :  { %v77_v2 = vld [vmem:[#allocation5 + $0x78] sm:$0xff]  ;;  %168 = vmatpush.msra.mxu2 %v109_v0  ;;  %v76_v4 = vld [vmem:[#allocation5 + $0x70] sm:$0xff]  ;;  %v107_v5 = vld [vmem:[#allocation5 + $0x168] sm:$0xff] }
   0xe   :  { %110 = vmatpush.msra.mxu0 %v77_v2  ;;  %v93_v3 = vld [vmem:[#allocation5 + $0xf8] sm:$0xff]  ;;  %241 = vmatpush.msra.mxu3 %v77_v2  ;;  %v92_v6 = vld [vmem:[#allocation5 + $0xf0] sm:$0xff]  ;;  %v75_v7 = vld [vmem:[#allocation5 + $0x68] sm:$0xff] }
   0xf   :  { %139 = vmatpush.msra.mxu1 %v93_v3  ;;  %169 = vmatpush.msra.mxu2 %v108_v1  ;;  %v91_v8 = vld [vmem:[#allocation5 + $0xe8] sm:$0xff]  ;;  %v106_v9 = vld [vmem:[#allocation5 + $0x160] sm:$0xff]  ;;  %v105_v12 = vld [vmem:[#allocation5 + $0x158] sm:$0xff] }
  0x10   :  { %111 = vmatpush.msra.mxu0 %v76_v4  ;;  %242 = vmatpush.msra.mxu3 %v76_v4  ;;  %v74_v10 = vld [vmem:[#allocation5 + $0x60] sm:$0xff]  ;;  %v73_v13 = vld [vmem:[#allocation5 + $0x58] sm:$0xff]  ;;  %v104_v15 = vld [vmem:[#allocation5 + $0x150] sm:$0xff] }
  0x11   :  { %140 = vmatpush.msra.mxu1 %v92_v6  ;;  %170 = vmatpush.msra.mxu2 %v107_v5  ;;  %v90_v11 = vld [vmem:[#allocation5 + $0xe0] sm:$0xff]  ;;  %v89_v14 = vld [vmem:[#allocation5 + $0xd8] sm:$0xff]  ;;  %v72_v16 = vld [vmem:[#allocation5 + $0x50] sm:$0xff] }
  0x12   :  { %112 = vmatpush.msra.mxu0 %v75_v7  ;;  %243 = vmatpush.msra.mxu3 %v75_v7  ;;  %v88_v17 = vld [vmem:[#allocation5 + $0xd0] sm:$0xff]  ;;  %v103_v18 = vld [vmem:[#allocation5 + $0x148] sm:$0xff]  ;;  %v102_v21 = vld [vmem:[#allocation5 + $0x140] sm:$0xff] }
  0x13   :  { %141 = vmatpush.msra.mxu1 %v91_v8  ;;  %171 = vmatpush.msra.mxu2 %v106_v9  ;;  %v71_v19 = vld [vmem:[#allocation5 + $0x48] sm:$0xff]  ;;  %v70_v22 = vld [vmem:[#allocation5 + $0x40] sm:$0xff]  ;;  %v101_v24 = vld [vmem:[#allocation5 + $0x138] sm:$0xff] }
  0x14   :  { %113 = vmatpush.msra.mxu0 %v74_v10  ;;  %244 = vmatpush.msra.mxu3 %v74_v10  ;;  %v87_v20 = vld [vmem:[#allocation5 + $0xc8] sm:$0xff]  ;;  %v86_v23 = vld [vmem:[#allocation5 + $0xc0] sm:$0xff]  ;;  %v69_v25 = vld [vmem:[#allocation5 + $0x38] sm:$0xff] }
  0x15   :  { %142 = vmatpush.msra.mxu1 %v90_v11  ;;  %172 = vmatpush.msra.mxu2 %v105_v12  ;;  %v85_v26 = vld [vmem:[#allocation5 + $0xb8] sm:$0xff]  ;;  %v100_v27 = vld [vmem:[#allocation5 + $0x130] sm:$0xff]  ;;  %v99_v30 = vld [vmem:[#allocation5 + $0x128] sm:$0xff] }
  0x16   :  { %114 = vmatpush.msra.mxu0 %v73_v13  ;;  %245 = vmatpush.msra.mxu3 %v73_v13  ;;  %v68_v28 = vld [vmem:[#allocation5 + $0x30] sm:$0xff]  ;;  %v67_v31 = vld [vmem:[#allocation5 + $0x28] sm:$0xff]  ;;  %v98_v33 = vld [vmem:[#allocation5 + $0x120] sm:$0xff] }
  0x17   :  { %143 = vmatpush.msra.mxu1 %v89_v14  ;;  %173 = vmatpush.msra.mxu2 %v104_v15  ;;  %v84_v29 = vld [vmem:[#allocation5 + $0xb0] sm:$0xff]  ;;  %v83_v32 = vld [vmem:[#allocation5 + $0xa8] sm:$0xff]  ;;  %v66_v34 = vld [vmem:[#allocation5 + $0x20] sm:$0xff] }
  0x18   :  { %115 = vmatpush.msra.mxu0 %v72_v16  ;;  %246 = vmatpush.msra.mxu3 %v72_v16  ;;  %v82_v35 = vld [vmem:[#allocation5 + $0xa0] sm:$0xff]  ;;  %v97_v36 = vld [vmem:[#allocation5 + $0x118] sm:$0xff]  ;;  %v96_v39 = vld [vmem:[#allocation5 + $0x110] sm:$0xff] }
  0x19   :  { %144 = vmatpush.msra.mxu1 %v88_v17  ;;  %174 = vmatpush.msra.mxu2 %v103_v18  ;;  %v65_v37 = vld [vmem:[#allocation5 + $0x18] sm:$0xff]  ;;  %v64_v40 = vld [vmem:[#allocation5 + $0x10] sm:$0xff]  ;;  %v95_v42 = vld [vmem:[#allocation5 + $0x108] sm:$0xff] }
  0x1a   :  { %116 = vmatpush.msra.mxu0 %v71_v19  ;;  %247 = vmatpush.msra.mxu3 %v71_v19  ;;  %v81_v38 = vld [vmem:[#allocation5 + $0x98] sm:$0xff]  ;;  %v80_v41 = vld [vmem:[#allocation5 + $0x90] sm:$0xff]  ;;  %v63_v43 = vld [vmem:[#allocation5 + $0x8] sm:$0xff] }
  0x1b   :  { %145 = vmatpush.msra.mxu1 %v87_v20  ;;  %175 = vmatpush.msra.mxu2 %v102_v21  ;;  %v79_v44 = vld [vmem:[#allocation5 + $0x88] sm:$0xff]  ;;  %v94_v45 = vld [vmem:[#allocation5 + $0x100] sm:$0xff]  ;;  %v52_v47 = vld [vmem:[#allocation2 + $0x10] sm:$0xff] }
  0x1c   :  { %117 = vmatpush.msra.mxu0 %v70_v22  ;;  %248 = vmatpush.msra.mxu3 %v70_v22  ;;  %v62_v46 = vld [vmem:[#allocation5] sm:$0xff]  ;;  %v51_v50 = vld [vmem:[#allocation2 + $0x8] sm:$0xff]  ;;  %v53_v51 = vld [vmem:[#allocation2 + $0x18] sm:$0xff] }
  0x1d   :  { %146 = vmatpush.msra.mxu1 %v86_v23  ;;  %176 = vmatpush.msra.mxu2 %v101_v24  ;;  %v78_v48 = vld [vmem:[#allocation5 + $0x80] sm:$0xff]  ;;  %v55_v52 = vld [vmem:[#allocation2 + $0x28] sm:$0xff]  ;;  %v56_v54 = vld [vmem:[#allocation2 + $0x30] sm:$0xff] }
  0x1e   :  { %118 = vmatpush.msra.mxu0 %v69_v25  ;;  %249 = vmatpush.msra.mxu3 %v69_v25  ;;  %v50_v49 = vld [vmem:[#allocation2] sm:$0xff]  ;;  %v57_v56 = vld [vmem:[#allocation2 + $0x38] sm:$0xff]  ;;  %v59_v57 = vld [vmem:[#allocation2 + $0x48] sm:$0xff] }
  0x1f   :  { %147 = vmatpush.msra.mxu1 %v85_v26  ;;  %177 = vmatpush.msra.mxu2 %v100_v27  ;;  %v54_v53 = vld [vmem:[#allocation2 + $0x20] sm:$0xff]  ;;  %v61_v58 = vld [vmem:[#allocation2 + $0x58] sm:$0xff]  ;;  %v60_v59 = vld [vmem:[#allocation2 + $0x50] sm:$0xff] }
  0x20   :  { %119 = vmatpush.msra.mxu0 %v68_v28  ;;  %250 = vmatpush.msra.mxu3 %v68_v28  ;;  %v58_v55 = vld [vmem:[#allocation2 + $0x40] sm:$0xff] }
  0x21   :  { %148 = vmatpush.msra.mxu1 %v84_v29  ;;  %178 = vmatpush.msra.mxu2 %v99_v30  ;;  %v264_v63 = vld [vmem:[%s399_s2] ss:$0 sm:$0xff]  ;;  %s350_s2 = smov [#allocation7]  }
  0x22   :  { %120 = vmatpush.msra.mxu0 %v67_v31  ;;  %251 = vmatpush.msra.mxu3 %v67_v31  ;;  %v265_v2 = vld [vmem:[%s400_s3] ss:$0 sm:$0xff]  ;;  %s225_s3 = sshll.u32 %s350_s2, 4  ;;  %s226_s3 = int_to_ptr.vmem [resolvable:$true] %s225_s3 }
  0x23   :  { %149 = vmatpush.msra.mxu1 %v83_v32  ;;  %179 = vmatpush.msra.mxu2 %v98_v33 }
  0x24   :  { %121 = vmatpush.msra.mxu0 %v66_v34  ;;  %252 = vmatpush.msra.mxu3 %v66_v34 }
  0x25   :  { %150 = vmatpush.msra.mxu1 %v82_v35  ;;  %180 = vmatpush.msra.mxu2 %v97_v36 }
  0x26   :  { %122 = vmatpush.msra.mxu0 %v65_v37  ;;  %253 = vmatpush.msra.mxu3 %v65_v37 }
  0x27   :  { %151 = vmatpush.msra.mxu1 %v81_v38  ;;  %181 = vmatpush.msra.mxu2 %v96_v39 }
  0x28   :  { %123 = vmatpush.msra.mxu0 %v64_v40  ;;  %254 = vmatpush.msra.mxu3 %v64_v40 }
  0x29   :  { %152 = vmatpush.msra.mxu1 %v80_v41  ;;  %182 = vmatpush.msra.mxu2 %v95_v42 }
  0x2a   :  { %124 = vmatpush.msra.mxu0 %v63_v43  ;;  %255 = vmatpush.msra.mxu3 %v63_v43 }
  0x2b   :  { %153 = vmatpush.msra.mxu1 %v79_v44  ;;  %183 = vmatpush.msra.mxu2 %v94_v45 }
  0x2c   :  { %125 = vmatpush.msra.mxu0 %v62_v46  ;;  %184 = vmatmul.f32.vlgmr.msra.gmra.mxu2 %v52_v47 }
  0x2d   :  { %154 = vmatpush.msra.mxu1 %v78_v48  ;;  %126 = vmatmul.f32.vlgmr.msra.gmra.mxu0 %v50_v49 }
  0x2e   :  { %155 = vmatmul.f32.vlgmr.msra.gmra.mxu1 %v51_v50  ;;  %256 = vmatpush.msra.mxu3 %v62_v46 }
  0x2f   :  { %129 = vmatmul.f32.vlgmr.msra.gmra.mxu3 %v53_v51 }
  0x34   :  { %187 = vmatmul.f32.gmra.mxu2 %v55_v52 }
  0x36   :  { %158 = vmatmul.f32.gmra.mxu1 %v54_v53 }
  0x37   :  { %132 = vmatmul.f32.gmra.mxu3 %v56_v54 }
  0x3c   :  { %190 = vmatmul.f32.gmra.mxu2 %v58_v55 }
  0x3e   :  { %161 = vmatmul.f32.gmra.mxu1 %v57_v56 }
  0x3f   :  { %135 = vmatmul.f32.gmra.mxu3 %v59_v57 }
  0x44   :  { %193 = vmatmul.f32.gmra.mxu2 %v61_v58 }
  0x46   :  { %164 = vmatmul.f32.gmra.mxu1 %v60_v59 }
  0xaa   :  { %v127_v60 = vpop.f32.mrf.mxu0 }
  0xab   :  { %v156_v61 = vpop.f32.mrf.mxu1 }
  0xac   :  { %v157_v62 = vadd.f32 %v156_v61, %v127_v60 }
  0xaf   :  { %v185_v0 = vpop.f32.mrf.mxu2 }
  0xb0   :  { %v186_v1 = vadd.f32 %v185_v0, %v157_v62 }
  0xb2   :  { %v201_v3 = vmul.f32 %v264_v63, %v186_v1  ;;  %v130_v4 = vpop.f32.mrf.mxu3 }
  0xb3   :  { %v159_v5 = vpop.f32.mrf.mxu1 }
  0xb4   :  { %v209_v6 = vadd.f32 %v265_v2, %v201_v3  ;;  %v160_v7 = vadd.f32 %v159_v5, %v130_v4 }
  0xb6   :  { %v213_v8 = vmax.f32 %v209_v6, 0.0 }
  0xb7   :  { %v188_v9 = vpop.f32.mrf.mxu2 }
  0xb8   :  { %217 = vst [vmem:[#allocation7] sm:$0xff] %v213_v8  ;;  %v189_v10 = vadd.f32 %v188_v9, %v160_v7 }
  0xba   :  { %v202_v11 = vmul.f32 %v264_v63, %v189_v10  ;;  %v133_v12 = vpop.f32.mrf.mxu3 }
  0xbb   :  { %v162_v13 = vpop.f32.mrf.mxu1 }
  0xbc   :  { %v210_v14 = vadd.f32 %v265_v2, %v202_v11  ;;  %v163_v15 = vadd.f32 %v162_v13, %v133_v12 }
  0xbe   :  { %v214_v16 = vmax.f32 %v210_v14, 0.0 }
  0xbf   :  { %v191_v17 = vpop.f32.mrf.mxu2 }
  0xc0   :  { %218 = vst [vmem:[#allocation7 + $0x8] sm:$0xff] %v214_v16  ;;  %v192_v18 = vadd.f32 %v191_v17, %v163_v15 }
  0xc2   :  { %v203_v19 = vmul.f32 %v264_v63, %v192_v18  ;;  %v136_v20 = vpop.f32.mrf.mxu3 }
  0xc3   :  { %v165_v21 = vpop.f32.mrf.mxu1 }
  0xc4   :  { %v211_v22 = vadd.f32 %v265_v2, %v203_v19  ;;  %v166_v23 = vadd.f32 %v165_v21, %v136_v20 }
  0xc6   :  { %v215_v24 = vmax.f32 %v211_v22, 0.0 }
  0xc7   :  { %v194_v25 = vpop.f32.mrf.mxu2 }
  0xc8   :  { %219 = vst [vmem:[#allocation7 + $0x10] sm:$0xff] %v215_v24  ;;  %v195_v26 = vadd.f32 %v194_v25, %v166_v23 }
  0xca   :  { %v204_v27 = vmul.f32 %v264_v63, %v195_v26 }
  0xcc   :  { %v212_v28 = vadd.f32 %v265_v2, %v204_v27 }
  0xce   :  { %v216_v29 = vmax.f32 %v212_v28, 0.0 }
  0xd0   :  { %220 = vst [vmem:[#allocation7 + $0x18] sm:$0xff] %v216_v29 }
  0xd1   :  { %233 = dma.vmem_to_hbm [thread:$0]  %s226_s3, 512, %s228_s7, [#allocation4], %s348_s27, %s348_s27, %s349_s28  }
  0xd2   :  { %342 = dma.done.wait [#allocation4], 512  }
  0xd3   :  { %343 = vsyncadd [#allocation4], 4294966784 }
  0xd4   :  { %238 = vsyncpa [#allocation3], 1 }
  0xd5   :  { %239 = vsyncpa [#allocation6], 1 }
  0xd6   :  { %240 = vsyncpa [#allocation4], 1 }

</bundles_post_ra>
